<compile_context>
chip_gen: v7x
topology: tpu7x:2x2x1
jax: 0.10.0
libtpu: 0.0.40
codegen_flags: <defaults>
</compile_context>

<pallas_src>
import jax
import jax.numpy as jnp
from jax import lax
from jax.experimental import pallas as pl
from jax.experimental.pallas import tpu as pltpu


def _round_up(x, m):
    return ((x + m - 1) // m) * m


def _linear_kernel(x_ref, w_ref, b_ref, o_ref):
    # x_ref: (TM, D)       activation row tile (rows past B in the last block
    #                      are unspecified; their outputs are discarded)
    # w_ref: (Np, D)       weight in PyTorch (out, in) layout, VMEM resident
    # b_ref: (1, Np) f32   bias, VMEM resident
    # o_ref: (TM, Np)      logits tile
    x = x_ref[...]
    w = w_ref[...]
    if x.dtype != w.dtype:
        # bf16 compute path: cast the activations in VMEM after the f32 DMA
        # instead of paying a separate per-call HBM astype pass over x.
        x = x.astype(w.dtype)
    acc = lax.dot_general(
        x, w,
        dimension_numbers=(((1,), (1,)), ((), ())),   # contract on D of both
        preferred_element_type=jnp.float32,
    )
    o_ref[...] = (acc + b_ref[...]).astype(o_ref.dtype)


def prepare_params(weight, bias, *, compute_dtype=None, lane_pad_min_labels=64):
    """One-time parameter prep (model init, NOT per forward call).

    * Lane-pads the label dim to a multiple of 128 only when num_labels is
      large enough that unmasked lane-dense stores beat the write
      amplification; for tiny N we keep true width + masked stores.
    * Casts the weight once to the compute dtype (e.g. bf16: halves the
      resident-weight footprint / DMA and feeds the bf16 MXU).
    * Bias becomes a (1, Np) f32 row so the bias add stays in f32.
    """
    N, D = weight.shape
    Np = _round_up(N, 128) if N >= lane_pad_min_labels else N
    if Np != N:
        weight = jnp.pad(weight, ((0, Np - N), (0, 0)))
        bias = jnp.pad(bias, (0, Np - N))
    cdt = compute_dtype if compute_dtype is not None else weight.dtype
    w_prep = weight.astype(cdt)
    b_prep = bias.reshape(1, Np).astype(jnp.float32)
    return w_prep, b_prep, N


def logistic_regression_forward(x, w_prep, b_prep, num_labels=None, *, tm=1024):
    """x: [B, D]; (w_prep, b_prep) from prepare_params -> logits [B, num_labels].

    tm: row tile. 1024 is a good v6e default; ~2048 on v7x, 512-1024 on v5e
    (VMEM cost at D=32 is trivial either way).
    """
    B, D = x.shape
    Np, D2 = w_prep.shape
    assert D == D2, "weight / input dim mismatch"
    N = Np if num_labels is None else num_labels
    out_dtype = x.dtype

    # Sublane granularity for the row tile (bf16 packs 16 rows per vreg).
    row_align = 16 if w_prep.dtype == jnp.bfloat16 else 8

    # No batch padding: cdiv grid; the final block may be partial.
    tm_eff = _round_up(min(tm, _round_up(B, row_align)), row_align)
    n_steps = -(-B // tm_eff)
    if n_steps == 1 and B >= 256:
        # Mid-size batch landing in a single step: split into 2 parallel steps
        # so v7x's two TensorCores both get work (harmless on v5e/v6e).
        tm_eff = _round_up(-(-B // 2), row_align)
        n_steps = -(-B // tm_eff)

    itemsize = lambda a: jnp.dtype(a.dtype).itemsize
    cost = pl.CostEstimate(
        flops=2 * B * Np * D,
        transcendentals=0,
        bytes_accessed=(B * D * itemsize(x)
                        + Np * D * itemsize(w_prep)
                        + Np * 4
                        + B * Np * jnp.dtype(out_dtype).itemsize),
    )

    out = pl.pallas_call(
        _linear_kernel,
        out_shape=jax.ShapeDtypeStruct((B, Np), out_dtype),
        grid=(n_steps,),
        in_specs=[
            pl.BlockSpec((tm_eff, D), lambda i: (i, 0)),   # x row tile
            pl.BlockSpec((Np, D), lambda i: (0, 0)),       # full weight, resident
            pl.BlockSpec((1, Np), lambda i: (0, 0)),       # bias, resident
        ],
        out_specs=pl.BlockSpec((tm_eff, Np), lambda i: (i, 0)),
        compiler_params=pltpu.CompilerParams(
            dimension_semantics=("parallel",),
        ),
        cost_estimate=cost,
    )(x, w_prep, b_prep)

    # Strip lane padding (only present for larger label counts).
    return out if Np == N else out[:, :N]


if __name__ == "__main__":
    # Config: input_dim=32, num_labels=8 (small, consistent with the module)
    input_dim = 32
    num_labels = 8

    key = jax.random.PRNGKey(0)
    kx, kw, kb, kx2, kx3 = jax.random.split(key, 5)

    # Deterministic synthetic params (mimics nn.Linear's [N, D] weight layout).
    bound = 1.0 / (input_dim ** 0.5)
    weight = jax.random.uniform(kw, (num_labels, input_dim),
                                minval=-bound, maxval=bound, dtype=jnp.float32)
    bias = jax.random.uniform(kb, (num_labels,),
                              minval=-bound, maxval=bound, dtype=jnp.float32)

    # One-time prep (f32 path): for N=8 this keeps true output width.
    w32, b32, n_out = prepare_params(weight, bias)

    # Case 1: f32, batch=16 -> single step, no padding, no output slice.
    x = jax.random.normal(kx, (16, input_dim), dtype=jnp.float32)
    out = jax.block_until_ready(logistic_regression_forward(x, w32, b32, n_out))
    ref = x @ weight.T + bias
    assert out.shape == (16, num_labels)
    assert jnp.allclose(out, ref, atol=1e-5, rtol=1e-5), "f32 mismatch vs reference"

    # Case 2: ragged batch (13 rows) -> one partial block, no batch padding.
    x2 = jax.random.normal(kx2, (13, input_dim), dtype=jnp.float32)
    out2 = jax.block_until_ready(logistic_regression_forward(x2, w32, b32, n_out))
    ref2 = x2 @ weight.T + bias
    assert out2.shape == (13, num_labels)
    assert jnp.allclose(out2, ref2, atol=1e-5, rtol=1e-5), "ragged mismatch vs reference"

    # Case 3: bf16 compute path (weight pre-cast once, x cast in-kernel), f32 acc.
    wbf, bbf, _ = prepare_params(weight, bias, compute_dtype=jnp.bfloat16)
    out3 = jax.block_until_ready(logistic_regression_forward(x, wbf, bbf, n_out))
    assert out3.shape == (16, num_labels)
    assert jnp.allclose(out3, ref, atol=5e-2, rtol=5e-2), "bf16 mismatch vs reference"

    # Case 4: mid-size batch -> auto-split into 2 parallel steps (v7x dual-TC),
    # with a partial final block.
    x3 = jax.random.normal(kx3, (300, input_dim), dtype=jnp.float32)
    out4 = jax.block_until_ready(logistic_regression_forward(x3, w32, b32, n_out))
    ref4 = x3 @ weight.T + bias
    assert out4.shape == (300, num_labels)
    assert jnp.allclose(out4, ref4, atol=1e-5, rtol=1e-5), "split mismatch vs reference"

    print("KERNEL_OK")
</pallas_src>

<mosaic_0001>
module attributes {stable_mosaic.version = 11 : i64} {
  func.func @_linear_kernel(%arg0: i32, %arg1: memref<16x32xf32, #tpu.memory_space<vmem>>, %arg2: memref<8x32xf32, #tpu.memory_space<vmem>>, %arg3: memref<1x8xf32, #tpu.memory_space<vmem>>, %arg4: memref<16x8xf32, #tpu.memory_space<vmem>>) attributes {dimension_semantics = [#tpu.dimension_semantics<parallel>], iteration_bounds = array<i64: 1>, scalar_prefetch = 0 : i64, scratch_operands = 0 : i64, tpu.core_type = #tpu.core_type<tc>, window_params = [{transform_indices = @transform_0, window_bounds = array<i64: 16, 32>}, {pipeline_mode = #tpu.pipeline_mode<synchronous>, transform_indices = @transform_1, window_bounds = array<i64: 8, 32>}, {pipeline_mode = #tpu.pipeline_mode<synchronous>, transform_indices = @transform_2, window_bounds = array<i64: 1, 8>}, {transform_indices = @transform_3, window_bounds = array<i64: 16, 8>}]} {
    %c0 = arith.constant 0 : index
    %c0_0 = arith.constant 0 : index
    %0 = vector.load %arg1[%c0, %c0_0] : memref<16x32xf32, #tpu.memory_space<vmem>>, vector<16x32xf32>
    %c0_1 = arith.constant 0 : index
    %c0_2 = arith.constant 0 : index
    %1 = vector.load %arg2[%c0_1, %c0_2] : memref<8x32xf32, #tpu.memory_space<vmem>>, vector<8x32xf32>
    %cst = arith.constant dense<0.000000e+00> : vector<16x8xf32>
    %2 = tpu.matmul %0, %1, %cst {dimension_numbers = #tpu.dot_dimension_numbers<[1], [1], [0], [0], [0, 0, 1, 0], [], []>} : vector<16x32xf32>, vector<8x32xf32>, vector<16x8xf32> -> vector<16x8xf32>
    %c0_3 = arith.constant 0 : index
    %c0_4 = arith.constant 0 : index
    %3 = vector.load %arg3[%c0_3, %c0_4] : memref<1x8xf32, #tpu.memory_space<vmem>>, vector<1x8xf32>
    %4 = vector.broadcast %3 : vector<1x8xf32> to vector<16x8xf32>
    %5 = arith.addf %2, %4 : vector<16x8xf32>
    %c0_5 = arith.constant 0 : index
    %c0_6 = arith.constant 0 : index
    %6 = vector.load %arg4[%c0_5, %c0_6] : memref<16x8xf32, #tpu.memory_space<vmem>>, vector<16x8xf32>
    tpu.vector_store %arg4[%c0_5, %c0_6], %5 {strides = array<i32>} : memref<16x8xf32, #tpu.memory_space<vmem>>, vector<16x8xf32>,
    return
  }
  func.func @transform_0(%arg0: i32) -> (i32, i32) {
    %c0_i32 = arith.constant 0 : i32
    %c0_i32_0 = arith.constant 0 : i32
    return %arg0, %c0_i32 : i32, i32
  }
  func.func @transform_1(%arg0: i32) -> (i32, i32) {
    %c0_i32 = arith.constant 0 : i32
    %c0_i32_0 = arith.constant 0 : i32
    %c0_i32_1 = arith.constant 0 : i32
    return %c0_i32, %c0_i32_0 : i32, i32
  }
  func.func @transform_2(%arg0: i32) -> (i32, i32) {
    %c0_i32 = arith.constant 0 : i32
    %c0_i32_0 = arith.constant 0 : i32
    %c0_i32_1 = arith.constant 0 : i32
    return %c0_i32, %c0_i32_0 : i32, i32
  }
  func.func @transform_3(%arg0: i32) -> (i32, i32) {
    %c0_i32 = arith.constant 0 : i32
    %c0_i32_0 = arith.constant 0 : i32
    return %arg0, %c0_i32 : i32, i32
  }
}

</mosaic_0001>

<bundles_post_ra>
// kernel: tpu_custom_call.1
= control target key start
LH: loop header
LB: loop body
LE: loop exit
PB: predicated region body
PF: predicated region fallthrough
CT: control target
= control target key end

     0   :  { %8 = vsyncpa [#allocation3], 0  ;;  %s265_s0 = inlined_call_operand.hbm [shape: f32[16,32], index: 0, kind: input, shape index: {}]   ;;  %s266_s1 = inlined_call_operand.hbm [shape: f32[8,32], index: 1, kind: input, shape index: {}]   ;;  %s267_s2 = inlined_call_operand.vmem [shape: f32[1,8], index: 2, kind: input, shape index: {}]   ;;  %s268_s3 = inlined_call_operand.vmem [shape: f32[16,8], index: 3, kind: output, shape index: {}]  }
   0x1   :  { %9 = vsyncpa [#allocation5], 0  ;;  %s208_s12 = smov [#allocation2]   ;;  %s160_s16 = scalar_lea.hbm %s265_s0, 256 }
   0x2   :  { %s15_s13 = sshll.u32 %s208_s12, 4  ;;  %p161_p0 = scmp.ne.s32.totalorder %s265_s0, %s160_s16  ;;  %s16_s13 = int_to_ptr.vmem [resolvable:$true] %s15_s13 }
   0x3   :  { %p164_p1 = scmp.lt.u32.totalorder %s160_s16, %s265_s0 }
   0x5   :  { %p166_p2 = pnand %p164_p1, %p161_p0 }
   0x7   :  { %169 = shalt.err (!%p166_p2)
}
   0x8   :  { %s170_s21 = scalar_lea.vmem %s16_s13, 256  ;;  %p175_p4 = scmp.lt.s32.totalorder %s16_s13, %s16_s13 }
   0x9   :  { %p171_p3 = scmp.ne.s32.totalorder %s16_s13, %s170_s21  ;;  %p176_p5 = scmp.lt.s32.totalorder %s170_s21, %s170_s21 }
   0xb   :  { %p177_p6 = por %p176_p5, %p175_p4 }
   0xd   :  { %p178_p7 = pnand %p177_p6, %p171_p3 }
   0xf   :  { %181 = shalt.err (!%p178_p7)
}
  0x10   :  { %s209_s22 = smov 128   ;;  %s210_s23 = smov 8  }
  0x11   :  { %21 = dma.hbm_to_vmem [thread:$0]  %s265_s0, 256, %s16_s13, [#allocation3], %s209_s22, %s209_s22, %s210_s23  }
  0x12   :  { %s211_s26 = smov [#allocation4]   ;;  %s182_s30 = scalar_lea.hbm %s266_s1, 128 }
  0x13   :  { %s28_s27 = sshll.u32 %s211_s26, 4  ;;  %p183_p8 = scmp.ne.s32.totalorder %s266_s1, %s182_s30  ;;  %s29_s27 = int_to_ptr.vmem [resolvable:$true] %s28_s27 }
  0x14   :  { %p186_p9 = scmp.lt.u32.totalorder %s182_s30, %s266_s1 }
  0x16   :  { %p188_p10 = pnand %p186_p9, %p183_p8 }
  0x18   :  { %191 = shalt.err (!%p188_p10)
}
  0x19   :  { %s192_s8 = scalar_lea.vmem %s29_s27, 128  ;;  %p197_p12 = scmp.lt.s32.totalorder %s29_s27, %s29_s27 }
  0x1a   :  { %p193_p11 = scmp.ne.s32.totalorder %s29_s27, %s192_s8  ;;  %p198_p13 = scmp.lt.s32.totalorder %s192_s8, %s192_s8 }
  0x1c   :  { %p199_p0 = por %p198_p13, %p197_p12 }
  0x1e   :  { %p200_p1 = pnand %p199_p0, %p193_p11 }
  0x20   :  { %203 = shalt.err (!%p200_p1)
}
  0x21   :  { %31 = dma.hbm_to_vmem [thread:$0]  %s266_s1, 128, %s29_s27, [#allocation5]  }
  0x22   :  { %204 = dma.done.wait [#allocation3], 256  }
  0x23   :  { %205 = vsyncadd [#allocation3], 4294967040 }
  0x24   :  { %206 = dma.done.wait [#allocation5], 128  }
  0x25   :  { %207 = vsyncadd [#allocation5], 4294967168  ;;  %vm50_vm0 = vcmask 261120   ;;  %v42_v0 = vld [vmem:[#allocation4] sm:$0xff]  ;;  %v40_v1 = vld [vmem:[#allocation2] sm:$0xff]  ;;  %vm135_vm1 = vcmask 64512  }
  0x26   :  { %151 = vmatprep.subr.msk.mxu0 %vm50_vm0, %v42_v0  ;;  %153 = vmatprep.mubr.msk.f32.mxu0 %vm50_vm0, %v40_v1  ;;  %v41_v2 = vld [vmem:[#allocation2 + $0x8] sm:$0xff]  ;;  %v144_v3 = vld [vmem:[%s267_s2] ss:$0 sm:$0xff] }
  0x27   :  { %152 = vmatpush3.xpose.msk.msra.mxu0 %vm50_vm0, %v42_v0 }
  0x2a   :  { %154 = vmatmul.mubr.msk.f32.vlgmr.msra.gmra.mrb[0].mxu0 %vm50_vm0, %v41_v2 }
  0xfd   :  { %v155_v4 = vpop.f32.mrb[0].mxu0 }
  0xfe   :  { %v132_v5 = vadd.f32 %v155_v4, %v144_v3  ;;  %v126_v6 = vpop.f32.mrb[1].mxu0 }
  0xff   :  { %v127_v7 = vadd.f32 %v144_v3, %v126_v6 }
 0x100   :  { %137 = vst.msk [vmem:[%s268_s3 + $0x8] sm:$0xff] %vm135_vm1, %v132_v5 }
 0x101   :  { %136 = vst.msk [vmem:[%s268_s3] sm:$0xff] %vm135_vm1, %v127_v7 }
 0x102   :  { %142 = vsyncpa [#allocation3], 1 }
 0x103   :  { %143 = vsyncpa [#allocation5], 1 }

</bundles_post_ra>
